<compile_context>
chip_gen: v5e
topology: v5e:2x2
jax: 0.10.0
libtpu: 0.0.40
codegen_flags: <defaults>
</compile_context>

<pallas_src>
import jax
import jax.numpy as jnp
from jax.experimental import pallas as pl
from jax.experimental.pallas import tpu as pltpu

GROUP = 8  # node rows folded into one lane-dense grouped row


def _music_node_encoder_kernel(x_ref, w_ref, b_ref, lb_ref, o_ref):
    # x_ref : [tm_g, GROUP*dim_in]            grouped node features
    # w_ref : [GROUP*dim_in, GROUP*emb_dim]   kron(I_GROUP, block_diag(I3, W))
    # b_ref : [1, GROUP*emb_dim]              GROUP-tiled [0, 0, 0, b]
    # lb_ref: [1, GROUP*emb_dim]              0.0 on MLP cols, -inf on passthrough cols
    # o_ref : [tm_g, GROUP*emb_dim]
    y = jnp.dot(x_ref[...], w_ref[...], preferred_element_type=jnp.float32)
    # bias + "ReLU only on MLP columns" = one VPU add + one VPU max
    y = jnp.maximum(y + b_ref[...], lb_ref[...])
    o_ref[...] = y.astype(o_ref.dtype)


def music_node_encoder(x, w, b, *, tm_rows=8 * 8192):
    """cat(x[:, :3], relu(x[:, 3:] @ w + b), axis=1) as a single Pallas matmul.

    x: [N, dim_in] f32, w: [dim_in-3, emb_dim-3], b: [emb_dim-3] -> [N, emb_dim].
    tm_rows: row tile measured in original node rows (internally GROUP-ed).
    """
    n, dim_in = x.shape
    in_feat, out_feat = w.shape
    assert dim_in == in_feat + 3
    emb_dim = out_feat + 3
    dtype = x.dtype
    elt = jnp.dtype(dtype).itemsize

    # ---- parameters: W'' = kron(I_GROUP, block_diag(I3, W)), tiled bias, ReLU bound
    w1 = jnp.zeros((dim_in, emb_dim), dtype)
    w1 = w1.at[:3, :3].set(jnp.eye(3, dtype=dtype))
    w1 = w1.at[3:, 3:].set(w.astype(dtype))
    wg = jnp.kron(jnp.eye(GROUP, dtype=dtype), w1)                 # [G*din, G*demb]
    b1 = jnp.concatenate([jnp.zeros((3,), dtype), b.astype(dtype)])
    bg = jnp.tile(b1, GROUP).reshape(1, GROUP * emb_dim)
    col = jnp.arange(GROUP * emb_dim) % emb_dim
    lbg = jnp.where(col >= 3, 0.0, -jnp.inf).astype(dtype).reshape(1, GROUP * emb_dim)

    # ---- group rows: [N, dim_in] -> [N/8, 8*dim_in] (pure row-major reshape;
    #      pad only to a multiple of GROUP, never to a multiple of the tile).
    n8 = pl.cdiv(n, GROUP) * GROUP
    x_p = jnp.pad(x, ((0, n8 - n), (0, 0))) if n8 != n else x
    n_g = n8 // GROUP
    din_g = GROUP * dim_in
    demb_g = GROUP * emb_dim
    x_g = x_p.reshape(n_g, din_g)

    # ---- row tile (grouped rows), VMEM- and megacore-aware
    in_lanes = pl.cdiv(din_g, 128) * 128        # VMEM lane padding of input tile
    out_lanes = pl.cdiv(demb_g, 128) * 128      # ... and of output tile
    bytes_per_grow = (in_lanes + out_lanes) * elt
    param_bytes = (wg.size + bg.size + lbg.size) * elt
    vmem_budget = 40 << 20                      # tile budget; v7x physical VMEM is 64 MiB/TC
    max_tm_vmem = max(8, vmem_budget // (2 * bytes_per_grow))   # double-buffered in+out

    tm_g = max(8, int(tm_rows) // GROUP)
    tm_g = min(tm_g, max_tm_vmem)
    if n_g > 2 * 8:
        # keep >= 2 grid steps so the "parallel" axis can shard across v7x's 2 TCs
        half = pl.cdiv(pl.cdiv(n_g, 2), 8) * 8
        tm_g = min(tm_g, half)
    if tm_g >= n_g:
        tm_g = n_g                              # single full-extent block
    else:
        tm_g = max(8, (tm_g // 8) * 8)          # blocked dim must be a multiple of 8

    grid = pl.cdiv(n_g, tm_g)                   # partial trailing block handled by Pallas

    # ---- compiler params: bump scoped VMEM only when the tile needs it
    vmem_needed = 2 * tm_g * bytes_per_grow + 2 * param_bytes + (2 << 20)
    cp_kwargs = dict(dimension_semantics=("parallel",))
    if vmem_needed > (16 << 20):                # v5e default scoped VMEM is 16 MiB
        cp_kwargs["vmem_limit_bytes"] = int(min(vmem_needed, 48 << 20))  # v7x-safe cap
    compiler_params = pltpu.CompilerParams(**cp_kwargs)

    cost = pl.CostEstimate(
        flops=2 * n_g * din_g * demb_g,
        transcendentals=0,
        bytes_accessed=int((x_g.size + n_g * demb_g) * elt + param_bytes),
    )

    out_g = pl.pallas_call(
        _music_node_encoder_kernel,
        out_shape=jax.ShapeDtypeStruct((n_g, demb_g), dtype),
        grid_spec=pltpu.PrefetchScalarGridSpec(
            num_scalar_prefetch=0,
            grid=(grid,),
            in_specs=[
                pl.BlockSpec((tm_g, din_g), lambda i: (i, 0)),
                # constant-index blocks stay resident in VMEM across grid steps
                pl.BlockSpec((din_g, demb_g), lambda i: (0, 0)),
                pl.BlockSpec((1, demb_g), lambda i: (0, 0)),
                pl.BlockSpec((1, demb_g), lambda i: (0, 0)),
            ],
            out_specs=pl.BlockSpec((tm_g, demb_g), lambda i: (i, 0)),
        ),
        compiler_params=compiler_params,
        cost_estimate=cost,
    )(x_g, wg, bg, lbg)

    # Ungroup rows (free reshape) and drop the <8 padded rows.
    return out_g.reshape(n8, emb_dim)[:n]


def _reference(x, w, b):
    h = jnp.maximum(x[:, 3:] @ w + b[None, :], 0.0)
    return jnp.concatenate([x[:, :3], h], axis=1)


if __name__ == "__main__":
    key = jax.random.PRNGKey(0)
    k_x, k_w, k_b = jax.random.split(key, 3)

    # Shapes consistent with the module: cfg.share.dim_in = 19 (3 passthrough +
    # 16 MLP input features), emb_dim = 35 (3 passthrough + 32 MLP outputs).
    # N = 200 -> 25 grouped rows: exercises the partial trailing grid block.
    N, dim_in, emb_dim = 200, 19, 35
    in_feat, out_feat = dim_in - 3, emb_dim - 3

    x = jax.random.normal(k_x, (N, dim_in), dtype=jnp.float32)
    # TODO(synk): PyTorch's MLP uses kaiming-uniform init; synthetic normals suffice here.
    w = jax.random.normal(k_w, (in_feat, out_feat), dtype=jnp.float32) * 0.1
    b = jax.random.normal(k_b, (out_feat,), dtype=jnp.float32) * 0.1

    out = jax.block_until_ready(music_node_encoder(x, w, b))
    ref = _reference(x, w, b)
    assert out.shape == (N, emb_dim)
    assert jnp.allclose(out, ref, atol=1e-5, rtol=1e-5), "mismatch vs reference"
    print("KERNEL_OK")
</pallas_src>

<mosaic_0001>
module attributes {stable_mosaic.version = 11 : i64} {
  func.func @_music_node_encoder_kernel(%arg0: i32, %arg1: memref<16x152xf32, #tpu.memory_space<vmem>>, %arg2: memref<152x280xf32, #tpu.memory_space<vmem>>, %arg3: memref<1x280xf32, #tpu.memory_space<vmem>>, %arg4: memref<1x280xf32, #tpu.memory_space<vmem>>, %arg5: memref<16x280xf32, #tpu.memory_space<vmem>>) attributes {dimension_semantics = [#tpu.dimension_semantics<parallel>], iteration_bounds = array<i64: 2>, scalar_prefetch = 0 : i64, scratch_operands = 0 : i64, tpu.core_type = #tpu.core_type<tc>, window_params = [{transform_indices = @transform_0, window_bounds = array<i64: 16, 152>}, {pipeline_mode = #tpu.pipeline_mode<synchronous>, transform_indices = @transform_1, window_bounds = array<i64: 152, 280>}, {pipeline_mode = #tpu.pipeline_mode<synchronous>, transform_indices = @transform_2, window_bounds = array<i64: 1, 280>}, {pipeline_mode = #tpu.pipeline_mode<synchronous>, transform_indices = @transform_3, window_bounds = array<i64: 1, 280>}, {transform_indices = @transform_4, window_bounds = array<i64: 16, 280>}]} {
    %c0 = arith.constant 0 : index
    %c0_0 = arith.constant 0 : index
    %0 = vector.load %arg1[%c0, %c0_0] : memref<16x152xf32, #tpu.memory_space<vmem>>, vector<16x152xf32>
    %c0_1 = arith.constant 0 : index
    %c0_2 = arith.constant 0 : index
    %1 = vector.load %arg2[%c0_1, %c0_2] : memref<152x280xf32, #tpu.memory_space<vmem>>, vector<152x280xf32>
    %cst = arith.constant dense<0.000000e+00> : vector<16x280xf32>
    %2 = tpu.matmul %0, %1, %cst {dimension_numbers = #tpu.dot_dimension_numbers<[1], [0], [0], [1], [0, 0, 1, 1], [], []>} : vector<16x152xf32>, vector<152x280xf32>, vector<16x280xf32> -> vector<16x280xf32>
    %c0_3 = arith.constant 0 : index
    %c0_4 = arith.constant 0 : index
    %3 = vector.load %arg3[%c0_3, %c0_4] : memref<1x280xf32, #tpu.memory_space<vmem>>, vector<1x280xf32>
    %4 = vector.broadcast %3 : vector<1x280xf32> to vector<16x280xf32>
    %5 = arith.addf %2, %4 : vector<16x280xf32>
    %c0_5 = arith.constant 0 : index
    %c0_6 = arith.constant 0 : index
    %6 = vector.load %arg4[%c0_5, %c0_6] : memref<1x280xf32, #tpu.memory_space<vmem>>, vector<1x280xf32>
    %7 = vector.broadcast %6 : vector<1x280xf32> to vector<16x280xf32>
    %8 = arith.maximumf %5, %7 : vector<16x280xf32>
    %c0_7 = arith.constant 0 : index
    %c0_8 = arith.constant 0 : index
    %9 = vector.load %arg5[%c0_7, %c0_8] : memref<16x280xf32, #tpu.memory_space<vmem>>, vector<16x280xf32>
    tpu.vector_store %arg5[%c0_7, %c0_8], %8 {strides = array<i32>} : memref<16x280xf32, #tpu.memory_space<vmem>>, vector<16x280xf32>,
    return
  }
  func.func @transform_0(%arg0: i32) -> (i32, i32) {
    %c0_i32 = arith.constant 0 : i32
    %c0_i32_0 = arith.constant 0 : i32
    return %arg0, %c0_i32 : i32, i32
  }
  func.func @transform_1(%arg0: i32) -> (i32, i32) {
    %c0_i32 = arith.constant 0 : i32
    %c0_i32_0 = arith.constant 0 : i32
    %c0_i32_1 = arith.constant 0 : i32
    return %c0_i32, %c0_i32_0 : i32, i32
  }
  func.func @transform_2(%arg0: i32) -> (i32, i32) {
    %c0_i32 = arith.constant 0 : i32
    %c0_i32_0 = arith.constant 0 : i32
    %c0_i32_1 = arith.constant 0 : i32
    return %c0_i32, %c0_i32_0 : i32, i32
  }
  func.func @transform_3(%arg0: i32) -> (i32, i32) {
    %c0_i32 = arith.constant 0 : i32
    %c0_i32_0 = arith.constant 0 : i32
    %c0_i32_1 = arith.constant 0 : i32
    return %c0_i32, %c0_i32_0 : i32, i32
  }
  func.func @transform_4(%arg0: i32) -> (i32, i32) {
    %c0_i32 = arith.constant 0 : i32
    %c0_i32_0 = arith.constant 0 : i32
    return %arg0, %c0_i32 : i32, i32
  }
}

</mosaic_0001>

<bundles_post_ra>
// kernel: tpu_custom_call.1
= control target key start
LH: loop header
LB: loop body
LE: loop exit
PB: predicated region body
PF: predicated region fallthrough
CT: control target
= control target key end

     0   :  { %9 = vsyncpa [#allocation3], 0  ;;  %s1152_s0 = inlined_call_operand.hbm [shape: f32[25,152], index: 0, kind: input, shape index: {}]   ;;  %s1153_s1 = inlined_call_operand.hbm [shape: f32[152,280], index: 1, kind: input, shape index: {}]   ;;  %s1154_s2 = inlined_call_operand.hbm [shape: f32[1,280], index: 2, kind: input, shape index: {}]   ;;  %s1155_s3 = inlined_call_operand.hbm [shape: f32[1,280], index: 3, kind: input, shape index: {}]   ;;  %s1156_s4 = inlined_call_operand.hbm [shape: f32[25,280], index: 4, kind: output, shape index: {}]  }
   0x1   :  { %11 = vsyncpa [#allocation3 + $0x1], 0 }
   0x2   :  { %12 = vsyncpa [#allocation6], 0 }
   0x3   :  { %13 = vsyncpa [#allocation9], 0 }
   0x4   :  { %14 = vsyncpa [#allocation4], 0 }
   0x5   :  { %16 = vsyncpa [#allocation4 + $0x1], 0  ;;  %s963_s15 = smov 0   ;;  %s965_s16 = smov 0  }
   0x6   :  { %s967_s17 = smov 0   ;;  %s969_s18 = smov 0  }
   0x7 LB: > { %s984_s19 = sadd.s32 4294967295, %s927_s18   ;;  %s620_s20 = sadd.s32 4294967294, %s927_s18   ;;  %s927_s18 = sphi %s969_s18, %s1167_s18   ;;  %s923_s17 = sphi %s967_s17, %s1166_s17   ;;  %s919_s16 = sphi %s965_s16, %s1165_s16   ;;  %s915_s15 = sphi %s963_s15, %s1164_s15  }
   0x8   : > { %p42_p0 = scmp.ne.s32.totalorder %s919_s16, %s915_s15  ;;  %p43_p1 = scmp.eq.s32.totalorder %s984_s19, 0 }
   0x9   : > { %p129_p2 = scmp.eq.s32.totalorder %s984_s19, 1  ;;  %p135_p3 = scmp.eq.s32.totalorder %s620_s20, 1 }
   0xa   : > { %p993_p4 = por %p43_p1, %p42_p0  ;;  %p621_p5 = scmp.ge.s32.totalorder %s927_s18, 1 }
   0xb   : > { %p998_p6 = por %p135_p3, %p42_p0  ;;  %p142_p7 = scmp.lt.s32.totalorder %s927_s18, 3 }
   0xc   : > { %s153_s25 = sshll.u32 %s1153_s1, 4  ;;  %s929_s27 = smov [#allocation5]   ;;  %s154_s25 = int_to_ptr.hbm [resolvable:$true] %s153_s25 }
   0xd   : > { %p1006_p8 = pnand %p621_p5, %p142_p7  ;;  %s155_s28 = sshll.u32 %s929_s27, 4  ;;  %s156_s28 = int_to_ptr.vmem [resolvable:$true] %s155_s28 }
   0xe   : > { %s168_s6 = sshll.u32 %s1154_s2, 4  ;;  %s930_s7 = smov 384   ;;  %s169_s6 = int_to_ptr.hbm [resolvable:$true] %s168_s6 }
   0xf   : > { %p666_p9 = pneg %p1006_p8  ;;  %s931_s8 = smov 24  }
  0x10   : > { %s932_s9 = smov [#allocation7]   ;;  %s180_s13 = sshll.u32 %s1155_s3, 4  ;;  %s181_s13 = int_to_ptr.hbm [resolvable:$true] %s180_s13 }
  0x11   : > { %p1014_p10 = pnand %p666_p9, %p43_p1  ;;  %s170_s10 = sshll.u32 %s932_s9, 4  ;;  %s171_s10 = int_to_ptr.vmem [resolvable:$true] %s170_s10 }
  0x12   : > { %s933_s14 = smov [#allocation8]   ;;  %s1030_s23 = sadd.s32 1, %s927_s18  }
  0x13   : > { %669 = dma.hbm_to_vmem [thread:$0]  (!%p1014_p10), %s154_s25, 7296, %s156_s28, [#allocation6], %s930_s7, %s930_s7, %s931_s8  }
  0x14   : > { %672 = dma.hbm_to_vmem [thread:$0]  (!%p1014_p10), %s169_s6, 48, %s171_s10, [#allocation6]  }
  0x15   : > { %s182_s20 = sshll.u32 %s933_s14, 4  ;;  %s26_s24 = ssub.s32 %s927_s18, %s1030_s23  ;;  %s183_s20 = int_to_ptr.vmem [resolvable:$true] %s182_s20 }
  0x16   : > { %675 = dma.hbm_to_vmem [thread:$0]  (!%p1014_p10), %s181_s13, 48, %s183_s20, [#allocation9]  }
  0x17   : > { %s29_s25 = sadd.s32 1, %s923_s17  ;;  %p27_p12 = scmp.eq.s32.totalorder %s26_s24, 0 }
  0x18   : > { %p36_p13 = scmp.ne.s32.totalorder %s923_s17, %s919_s16  ;;  %p37_p0 = scmp.eq.s32.totalorder %s927_s18, 0 }
  0x19   : > { %p687_p3 = scmp.lt.s32.totalorder %s927_s18, 2  ;;  %s193_s30 = sand.u32 1, %s923_s17  }
  0x1a   : > { %s1042_s27 = scalar_select %p27_p12, %s923_s17, %s29_s25  }
  0x1b   : > { %p38_p5 = por %p37_p0, %p36_p13  ;;  %p1046_p7 = por %p129_p2, %p36_p13 }
  0x1c   : > { %s647_s5 = sshll.u32 %s927_s18, 5  ;;  %s626_s29 = sshll.u32 %s193_s30, 5 }
  0x1d   : > { %s203_s8 = scalar_lea.hbm %s1152_s0, %s647_s5  ;;  %s197_s10 = scalar_lea.vmem [#allocation2], %s626_s29 }
  0x1e   : > { %s204_s9 = sshll.u32 %s203_s8, 4  ;;  %s206_s11 = sshll.u32 %s197_s10, 4  ;;  %s205_s9 = int_to_ptr.hbm [resolvable:$true] %s204_s9  ;;  %s207_s11 = int_to_ptr.vmem [resolvable:$true] %s206_s11 }
  0x1f   : > { %p1057_p9 = pnand %p687_p3, %p38_p5  ;;  %s194_s13 = scalar_lea.sflag [#allocation3], %s193_s30 }
  0x20   : > { %s823_s14 = sshra.s32 %s205_s9, 4  ;;  %s830_s5 = scalar_lea.hbm %s1152_s0, 64  ;;  %s824_s14 = int_to_ptr.hbm [resolvable:$true] %s823_s14 }
  0x21   : > { %s825_s20 = scalar_lea.hbm %s824_s14, 32  ;;  %p827_p10 = pneg %p1057_p9 }
  0x22   : > { %p826_p2 = scmp.ne.s32.totalorder %s824_s14, %s825_s20  ;;  %p831_p0 = scmp.lt.s32.totalorder %s824_s14, %s1152_s0 }
  0x23   : > { %p832_p3 = scmp.lt.s32.totalorder %s830_s5, %s825_s20 }
  0x24   : > { %p828_p12 = pnand %p827_p10, %p826_p2 }
  0x25   : > { %p833_p5 = por %p832_p3, %p831_p0 }
  0x26   : > { %p829_p13 = pneg %p828_p12 }
  0x28   : > { %p834_p11 = pnand %p833_p5, %p829_p13 }
  0x2a   : > { %837 = shalt.err (!%p834_p11)
}
  0x2b   : > { %s934_s30 = smov 256   ;;  %s935_s7 = smov 16  }
  0x2c   : > { %679 = dma.hbm_to_vmem [thread:$0]  (!%p1057_p9), %s205_s9, 512, %s207_s11, %s194_s13, %s934_s30, %s934_s30, %s935_s7  }
  0x2d   : > { %218 = sbr.rel (%p1006_p8) target bundleno = 239 (0xef), region = 36  ;;  %s1074_s8 = sand.u32 (!%p1006_p8), 1, %s919_s16  }
  0x2e   : > { %s631_s10 = sshll.u32 (!%p1006_p8), %s1074_s8, 5  ;;  %s221_s14 = scalar_lea.sflag (!%p1006_p8), [#allocation3], %s1074_s8 }
  0x2f   : > { %s1078_s20 = scalar_lea.vmem (!%p1006_p8), [#allocation2], %s631_s10 }
  0x32   : > { %898 = dma.done.wait (%p993_p4), %s221_s14, 512  }
  0x33   : > { %900 = vsyncadd (%p993_p4), %s221_s14, 4294966784 }
  0x34   : > { %902 = dma.done.wait (%p43_p1), [#allocation6], 7344  }
  0x35   : > { %904 = vsyncadd (%p43_p1), [#allocation6], 4294959952 }
  0x36   : > { %906 = dma.done.wait (%p43_p1), [#allocation9], 48  }
  0x37   : > { %908 = vsyncadd (%p43_p1), [#allocation9], 4294967248  ;;  %v316_v0 = vld [vmem:[#allocation5 + $0x168] sm:$0xff]  ;;  %v317_v1 = vld [vmem:[#allocation5 + $0x170] sm:$0xff]  ;;  %vm336_vm0 = vcmask 195584   ;;  %s648_s21 = smul.u32 48, %s1074_s8 }
  0x38   : > { %v325_v2 = vld [vmem:[#allocation5 + $0x1b0] sm:$0xff]  ;;  %343 = vmatpush.msra.mxu0 %v316_v0  ;;  %389 = vmatpush.msra.mxu2 %v317_v1  ;;  %v314_v4 = vld [vmem:[#allocation5 + $0x158] sm:$0xff]  ;;  %v311_v7 = vld [vmem:[#allocation5 + $0x140] sm:$0xff]  ;;  %s649_s9 = smul.u32 48, %s984_s19  ;;  %s502_s25 = scalar_lea.sflag [#allocation4], %s1074_s8 }
  0x39   : > { %v313_v3 = vld [vmem:[#allocation5 + $0x150] sm:$0xff]  ;;  %v322_v5 = vld [vmem:[#allocation5 + $0x198] sm:$0xff]  ;;  %379 = vmatpush.msra.mxu1 %v325_v2  ;;  %v319_v8 = vld [vmem:[#allocation5 + $0x180] sm:$0xff]  ;;  %s1108_s26 = scalar_lea.vmem [#allocation10], %s648_s21  ;;  %s873_s7 = scalar_lea.hbm %s1156_s4, 96 }
  0x3a   : > { %v310_v6 = vld [vmem:[#allocation5 + $0x138] sm:$0xff]  ;;  %344 = vmatpush.msra.mxu0 %v313_v3  ;;  %390 = vmatpush.msra.mxu2 %v314_v4  ;;  %v307_v9 = vld [vmem:[#allocation5 + $0x120] sm:$0xff]  ;;  %v308_v10 = vld [vmem:[#allocation5 + $0x128] sm:$0xff]  ;;  %s514_s13 = scalar_lea.hbm %s1156_s4, %s649_s9  ;;  %s515_s24 = sshll.u32 %s1108_s26, 4  ;;  %s516_s24 = int_to_ptr.vmem [resolvable:$true] %s515_s24 }
  0x3b   : > { %380 = vmatpush.msra.mxu1 %v322_v5  ;;  %v318_v11 = vld [vmem:[#allocation5 + $0x178] sm:$0xff]  ;;  %v304_v12 = vld [vmem:[#allocation5 + $0x108] sm:$0xff]  ;;  %v305_v13 = vld [vmem:[#allocation5 + $0x110] sm:$0xff]  ;;  %s517_s19 = sshll.u32 %s514_s13, 4  ;;  %s518_s19 = int_to_ptr.hbm [resolvable:$true] %s517_s19 }
  0x3c   : > { %345 = vmatpush.msra.mxu0 %v310_v6  ;;  %391 = vmatpush.msra.mxu2 %v311_v7  ;;  %v326_v14 = vld [vmem:[#allocation5 + $0x1b8] sm:$0xff]  ;;  %v315_v15 = vld [vmem:[#allocation5 + $0x160] sm:$0xff]  ;;  %v301_v16 = vld [vmem:[#allocation5 + $0xf0] sm:$0xff]  ;;  %s867_s5 = sshra.s32 %s518_s19, 4  ;;  %s868_s5 = int_to_ptr.hbm [resolvable:$true] %s867_s5 }
  0x3d   : > { %381 = vmatpush.msra.mxu1 %v319_v8  ;;  %v302_v17 = vld [vmem:[#allocation5 + $0xf8] sm:$0xff]  ;;  %425 = vmatpush.msra.mxu3 %v326_v14  ;;  %v323_v18 = vld [vmem:[#allocation5 + $0x1a0] sm:$0xff]  ;;  %v312_v19 = vld [vmem:[#allocation5 + $0x148] sm:$0xff]  ;;  %s869_s29 = scalar_lea.hbm %s868_s5, 48  ;;  %p874_p11 = scmp.lt.s32.totalorder %s868_s5, %s1156_s4 }
  0x3e   : > { %346 = vmatpush.msra.mxu0 %v307_v9  ;;  %392 = vmatpush.msra.mxu2 %v308_v10  ;;  %v320_v20 = vld [vmem:[#allocation5 + $0x188] sm:$0xff]  ;;  %v298_v21 = vld [vmem:[#allocation5 + $0xd8] sm:$0xff]  ;;  %v299_v22 = vld [vmem:[#allocation5 + $0xe0] sm:$0xff]  ;;  %p870_p1 = scmp.ne.s32.totalorder %s868_s5, %s869_s29  ;;  %p875_p9 = scmp.lt.s32.totalorder %s873_s7, %s869_s29 }
  0x3f   : > { %435 = vmatpush.msrb.mxu1 %v318_v11  ;;  %426 = vmatpush.msra.mxu3 %v323_v18  ;;  %v309_v23 = vld [vmem:[#allocation5 + $0x130] sm:$0xff]  ;;  %v1093_v24 = vld [vmem:[%s1078_s20 + $0x8] sm:$0xff]  ;;  %v295_v25 = vld [vmem:[#allocation5 + $0xc0] sm:$0xff] }
  0x40   : > { %347 = vmatpush.msra.mxu0 %v304_v12  ;;  %393 = vmatpush.msra.mxu2 %v305_v13  ;;  %v296_v26 = vld [vmem:[#allocation5 + $0xc8] sm:$0xff]  ;;  %v306_v27 = vld [vmem:[#allocation5 + $0x118] sm:$0xff]  ;;  %v327_v28 = vld [vmem:[#allocation5 + $0x1c0] sm:$0xff]  ;;  %p871_p4 = pnand %p870_p1, %p1046_p7  ;;  %p876_p2 = por %p875_p9, %p874_p11 }
  0x41   : > { %436 = vmatpush.msrb.mxu1 %v315_v15  ;;  %427 = vmatpush.msra.mxu3 %v320_v20  ;;  %v292_v29 = vld [vmem:[#allocation5 + $0xa8] sm:$0xff]  ;;  %v293_v30 = vld [vmem:[#allocation5 + $0xb0] sm:$0xff]  ;;  %v303_v31 = vld [vmem:[#allocation5 + $0x100] sm:$0xff] }
  0x42   : > { %348 = vmatpush.msra.mxu0 %v301_v16  ;;  %394 = vmatpush.msra.mxu2 %v302_v17  ;;  %v324_v32 = vld [vmem:[#allocation5 + $0x1a8] sm:$0xff]  ;;  %v289_v33 = vld [vmem:[#allocation5 + $0x90] sm:$0xff]  ;;  %v290_v34 = vld [vmem:[#allocation5 + $0x98] sm:$0xff]  ;;  %p872_p8 = pneg %p871_p4 }
  0x43   : > { %437 = vmatpush.msrb.mxu1 %v312_v19  ;;  %637 = vmatmul.msk.f32.vlgmr.msra.gmra.mxu3 %vm336_vm0, %v1093_v24  ;;  %v300_v35 = vld [vmem:[#allocation5 + $0xe8] sm:$0xff]  ;;  %v321_v36 = vld [vmem:[#allocation5 + $0x190] sm:$0xff]  ;;  %v286_v37 = vld [vmem:[#allocation5 + $0x78] sm:$0xff] }
  0x44   : > { %349 = vmatpush.msra.mxu0 %v298_v21  ;;  %395 = vmatpush.msra.mxu2 %v299_v22  ;;  %v287_v38 = vld [vmem:[#allocation5 + $0x80] sm:$0xff]  ;;  %v297_v39 = vld [vmem:[#allocation5 + $0xd0] sm:$0xff]  ;;  %v270_v40 = vld [vmem:[%s1078_s20 + $0x18] sm:$0xff]  ;;  %p877_p10 = pnand %p876_p2, %p872_p8 }
  0x45   : > { %438 = vmatpush.msrb.mxu1 %v309_v23  ;;  %471 = vmatpush.msrb.mxu3 %v327_v28  ;;  %v283_v41 = vld [vmem:[#allocation5 + $0x60] sm:$0xff]  ;;  %v284_v42 = vld [vmem:[#allocation5 + $0x68] sm:$0xff]  ;;  %v294_v43 = vld [vmem:[#allocation5 + $0xb8] sm:$0xff] }
  0x46   : > { %350 = vmatpush.msra.mxu0 %v295_v25  ;;  %396 = vmatpush.msra.mxu2 %v296_v26  ;;  %v280_v44 = vld [vmem:[#allocation5 + $0x48] sm:$0xff]  ;;  %v281_v45 = vld [vmem:[#allocation5 + $0x50] sm:$0xff]  ;;  %v291_v46 = vld [vmem:[#allocation5 + $0xa0] sm:$0xff] }
  0x47   : > { %439 = vmatpush.msrb.mxu1 %v306_v27  ;;  %472 = vmatpush.msrb.mxu3 %v324_v32  ;;  %v277_v47 = vld [vmem:[#allocation5 + $0x30] sm:$0xff]  ;;  %v278_v48 = vld [vmem:[#allocation5 + $0x38] sm:$0xff]  ;;  %v288_v49 = vld [vmem:[#allocation5 + $0x88] sm:$0xff] }
  0x48   : > { %351 = vmatpush.msra.mxu0 %v292_v29  ;;  %397 = vmatpush.msra.mxu2 %v293_v30  ;;  %v274_v50 = vld [vmem:[#allocation5 + $0x18] sm:$0xff]  ;;  %v275_v51 = vld [vmem:[#allocation5 + $0x20] sm:$0xff]  ;;  %v285_v52 = vld [vmem:[#allocation5 + $0x70] sm:$0xff] }
  0x49   : > { %440 = vmatpush.msrb.mxu1 %v303_v31  ;;  %473 = vmatpush.msrb.mxu3 %v321_v36  ;;  %v271_v53 = vld [vmem:[#allocation5] sm:$0xff]  ;;  %v272_v54 = vld [vmem:[#allocation5 + $0x8] sm:$0xff]  ;;  %v282_v55 = vld [vmem:[#allocation5 + $0x58] sm:$0xff] }
  0x4a   : > { %352 = vmatpush.msra.mxu0 %v289_v33  ;;  %398 = vmatpush.msra.mxu2 %v290_v34  ;;  %v267_v56 = vld [vmem:[%s1078_s20] sm:$0xff]  ;;  %v276_v58 = vld [vmem:[#allocation5 + $0x28] sm:$0xff]  ;;  %v273_v59 = vld [vmem:[#allocation5 + $0x10] sm:$0xff] }
  0x4b   : > { %441 = vmatpush.msrb.mxu1 %v300_v35  ;;  %638 = vmatmul.msk.f32.gmra.mxu3 %vm336_vm0, %v270_v40  ;;  %v279_v57 = vld [vmem:[#allocation5 + $0x40] sm:$0xff]  ;;  %v269_v60 = vld [vmem:[%s1078_s20 + $0x10] sm:$0xff]  ;;  %v328_v63 = vld [vmem:[#allocation7] sm:$0x7] }
  0x4c   : > { %353 = vmatpush.msra.mxu0 %v286_v37  ;;  %399 = vmatpush.msra.mxu2 %v287_v38  ;;  %v330_v0 = vperm.slane %v328_v63, 0  ;;  %v481_v3 = vld [vmem:[#allocation8] sm:$0x7]  ;;  %v331_v8 = vperm.slane %v328_v63, 1  ;;  %v332_v9 = vperm.slane %v328_v63, 2 }
  0x4d   : > { %442 = vmatpush.msrb.mxu1 %v297_v39  ;;  %v483_v6 = vperm.slane %v481_v3, 0  ;;  %v484_v14 = vperm.slane %v481_v3, 1  ;;  %v485_v17 = vperm.slane %v481_v3, 2 }
  0x4e   : > { %635 = vmatmul.msk.f32.vlgmr.msra.gmra.mxu1 %vm336_vm0, %v1093_v24  ;;  %354 = vmatpush.msra.mxu0 %v283_v41 }
  0x4f   : > { %400 = vmatpush.msra.mxu2 %v284_v42  ;;  %443 = vmatpush.msrb.mxu1 %v294_v43 }
  0x50   : > { %355 = vmatpush.msra.mxu0 %v280_v44 }
  0x51   : > { %401 = vmatpush.msra.mxu2 %v281_v45  ;;  %444 = vmatpush.msrb.mxu1 %v291_v46 }
  0x52   : > { %356 = vmatpush.msra.mxu0 %v277_v47 }
  0x53   : > { %402 = vmatpush.msra.mxu2 %v278_v48  ;;  %445 = vmatpush.msrb.mxu1 %v288_v49 }
  0x54   : > { %357 = vmatpush.msra.mxu0 %v274_v50  ;;  %639 = vmatmul.msk.f32.vlgmr.msrb.gmra.mxu3 %vm336_vm0, %v1093_v24 }
  0x55   : > { %403 = vmatpush.msra.mxu2 %v275_v51  ;;  %446 = vmatpush.msrb.mxu1 %v285_v52 }
  0x56   : > { %636 = vmatmul.msk.f32.gmra.mxu1 %vm336_vm0, %v270_v40  ;;  %358 = vmatpush.msra.mxu0 %v271_v53 }
  0x57   : > { %404 = vmatpush.msra.mxu2 %v272_v54  ;;  %447 = vmatpush.msrb.mxu1 %v282_v55 }
  0x58   : > { %359 = vmatmul.f32.vlgmr.msra.gmra.mxu0 %v267_v56  ;;  %405 = vmatmul.f32.vlgmr.msra.gmra.mxu2 %v267_v56 }
  0x59   : > { %448 = vmatpush.msrb.mxu1 %v279_v57 }
  0x5b   : > { %449 = vmatpush.msrb.mxu1 %v276_v58 }
  0x5c   : > { %640 = vmatmul.msk.f32.gmra.mxu3 %vm336_vm0, %v270_v40 }
  0x5d   : > { %450 = vmatpush.msrb.mxu1 %v273_v59 }
  0x5e   : > { %451 = vmatmul.f32.vlgmr.msrb.gmra.mxu1 %v267_v56 }
  0x60   : > { %362 = vmatmul.f32.gmra.mxu0 %v269_v60  ;;  %408 = vmatmul.f32.gmra.mxu2 %v269_v60 }
  0x66   : > { %454 = vmatmul.f32.gmra.mxu1 %v269_v60 }
  0xc6   : > { %v429_v61 = vpop.f32.mrf.mxu3 }
  0xcb   : > { %v383_v62 = vpop.f32.mrf.mxu1 }
  0xce   : > { %v432_v1 = vpop.f32.mrf.mxu3 }
  0xd3   : > { %v386_v2 = vpop.f32.mrf.mxu1 }
  0xd5   : > { %v360_v4 = vpop.f32.mrf.mxu0 }
  0xd6   : > { %v361_v5 = vadd.f32 %v360_v4, %v330_v0 }
  0xd7   : > { %v475_v16 = vpop.f32.mrf.mxu3 }
  0xd8   : > { %v384_v7 = vadd.f32 %v383_v62, %v361_v5 }
  0xda   : > { %v489_v10 = vmax.f32 %v384_v7, %v483_v6 }
  0xdb   : > { %v406_v11 = vpop.f32.mrf.mxu2  ;;  %v452_v12 = vpop.f32.mrf.mxu1 }
  0xdc   : > { %495 = vst [vmem:[%s1108_s26] sm:$0xff] %v489_v10  ;;  %v407_v13 = vadd.f32 %v406_v11, %v331_v8  ;;  %v453_v15 = vadd.f32 %v452_v12, %v332_v9 }
  0xdd   : > { %v363_v18 = vpop.f32.mrf.mxu0 }
  0xde   : > { %v430_v19 = vadd.f32 %v429_v61, %v407_v13  ;;  %v364_v20 = vadd.f32 %v363_v18, %v330_v0  ;;  %v476_v21 = vadd.f32 %v475_v16, %v453_v15 }
  0xdf   : > { %v478_v30 = vpop.f32.mrf.mxu3 }
  0xe0   : > { %v490_v22 = vmax.f32 %v430_v19, %v484_v14  ;;  %v387_v23 = vadd.f32 %v386_v2, %v364_v20  ;;  %v491_v24 = vmax.f32 %v476_v21, %v485_v17 }
  0xe2   : > { %496 = vst [vmem:[%s1108_s26 + $0x8] sm:$0xff] %v490_v22  ;;  %v492_v25 = vmax.f32 %v387_v23, %v483_v6 }
  0xe3   : > { %497 = vst.msk [vmem:[%s1108_s26 + $0x10] sm:$0xff] %vm336_vm0, %v491_v24  ;;  %v409_v26 = vpop.f32.mrf.mxu2  ;;  %v455_v27 = vpop.f32.mrf.mxu1 }
  0xe4   : > { %498 = vst [vmem:[%s1108_s26 + $0x18] sm:$0xff] %v492_v25  ;;  %v410_v28 = vadd.f32 %v409_v26, %v331_v8  ;;  %v456_v29 = vadd.f32 %v455_v27, %v332_v9 }
  0xe6   : > { %v433_v31 = vadd.f32 %v432_v1, %v410_v28  ;;  %v479_v32 = vadd.f32 %v478_v30, %v456_v29 }
  0xe8   : > { %v493_v33 = vmax.f32 %v433_v31, %v484_v14  ;;  %v494_v34 = vmax.f32 %v479_v32, %v485_v17 }
  0xea   : > { %499 = vst [vmem:[%s1108_s26 + $0x20] sm:$0xff] %v493_v33 }
  0xeb   : > { %500 = vst.msk [vmem:[%s1108_s26 + $0x28] sm:$0xff] %vm336_vm0, %v494_v34 }
  0xec   : > { %880 = shalt.err (!%p877_p10)
}
  0xed   : > { %s936_s8 = smov 384   ;;  %s937_s20 = smov 24  }
  0xee   : > { %664 = dma.vmem_to_hbm [thread:$0]  (%p1046_p7), %s516_s24, 768, %s518_s19, %s502_s25, %s936_s8, %s936_s8, %s937_s20  }
  0xef PF: > { %s532_s21 = sand.u32 1, %s915_s15   ;;  %p1163_p12 = scmp.ge.s32.totalorder %s927_s18, 2 }
  0xf0   : > { %s533_s26 = scalar_lea.sflag [#allocation4], %s532_s21 }
  0xf1   : > { %p681_p13 = pnand %p1163_p12, %p998_p6 }
  0xf3   : > { %p682_p0 = pneg %p681_p13 }
  0xf5   : > { %910 = dma.done.wait (%p682_p0), %s533_s26, 768  }
  0xf6   : > { %912 = vsyncadd (%p682_p0), %s533_s26, 4294966528  ;;  %p19_p3 = scmp.ge.s32.totalorder %s1030_s23, 4   ;;  %s1164_s15 = smov %s919_s16 }
  0xf7   : > { %s1165_s16 = smov %s923_s17  ;;  %s1166_s17 = smov %s1042_s27 }
  0xf8   : > { %s1167_s18 = smov %s1030_s23  ;;  %21 = sbr.rel (!%p19_p3) target bundleno = 7 (0x7), region = 93 }
  0xfd   :  { %539 = vsyncpa [#allocation3], 1 }
  0xfe   :  { %541 = vsyncpa [#allocation3 + $0x1], 1 }
  0xff   :  { %542 = vsyncpa [#allocation6], 1 }
 0x100   :  { %543 = vsyncpa [#allocation9], 1 }
 0x101   :  { %544 = vsyncpa [#allocation4], 1 }
 0x102   :  { %546 = vsyncpa [#allocation4 + $0x1], 1 }

</bundles_post_ra>
